<compile_context>
chip_gen: v7x
topology: tpu7x:2x2x1
jax: 0.10.0
libtpu: 0.0.40
codegen_flags: <defaults>
</compile_context>

<pallas_src>
import functools

import jax
import jax.numpy as jnp
from jax.experimental import pallas as pl
from jax.experimental.pallas import tpu as pltpu

LANE = 128
SUBLANE = 8
_V7X_SAFE_VMEM = 56 << 20  # stay under v7x's 64 MiB per-TC physical VMEM


def _round_up(x, m):
    return (x + m - 1) // m * m


def _sbert_classifier_kernel(a_ref, b_ref, w_ref, bias_ref, out_ref):
    a = a_ref[...]                      # (TB, D) f32, read straight from the HBM tile
    b = b_ref[...]                      # (TB, D) f32
    # |u - v| in f32: avoids cancellation on pre-rounded bf16 values and is
    # VPU-native on v5e.  Only the MXU operands are cast down.
    diff = jnp.abs(a - b)
    wdt = w_ref.dtype
    # out = concat([u, v, |u-v|], 1) @ W^T + bias
    #     = u @ W0 + v @ W1 + |u-v| @ W2 + bias, f32 accumulation on the MXU.
    acc = jnp.dot(a.astype(wdt), w_ref[0], preferred_element_type=jnp.float32)
    acc += jnp.dot(b.astype(wdt), w_ref[1], preferred_element_type=jnp.float32)
    acc += jnp.dot(diff.astype(wdt), w_ref[2], preferred_element_type=jnp.float32)
    acc += bias_ref[...]                # (1, L) f32 broadcasts over the batch tile
    out_ref[...] = acc.astype(out_ref.dtype)


def prepare_classifier_params(weight, bias, *, param_dtype=jnp.bfloat16):
    """One-time prep (outside the hot path): PyTorch nn.Linear(3*D, L) params
    -> contiguous pre-transposed (3, D, L) slab + (1, L) f32 bias."""
    L, three_d = weight.shape
    D = three_d // 3
    # weight.T is (3D, L); the reshape splits rows into the [u, v, |u-v|] segments.
    w3 = weight.T.reshape(3, D, L).astype(param_dtype)
    bias2d = bias.reshape(1, L).astype(jnp.float32)
    return w3, bias2d


def _tile_vmem_bytes(tb, D, L, in_itemsize, w_itemsize):
    """Generous per-step VMEM footprint estimate."""
    Lp = _round_up(max(L, 1), LANE)
    return (2 * 2 * tb * D * in_itemsize    # rep_a, rep_b double-buffered input tiles
            + 2 * 3 * D * Lp * w_itemsize   # resident weight slab (x2 to be safe)
            + 2 * tb * Lp * 4               # f32 output tile pipeline
            + 4 * tb * D * 4                # in-kernel temporaries (|u-v|, casts)
            + (1 << 20))                    # bias + internal scratch slack


def _choose_batch_tile(B, D, L, block_b, in_itemsize, w_itemsize):
    # Cap at ceil(B/2) so the ("parallel",) grid has >= 2 steps and both v7x
    # TensorCores get work; keep the sublane-multiple constraint on the tile.
    tb = min(block_b, _round_up(max(pl.cdiv(B, 2), 1), SUBLANE))
    tb = max(tb, SUBLANE)
    while tb > SUBLANE and _tile_vmem_bytes(tb, D, L, in_itemsize, w_itemsize) > _V7X_SAFE_VMEM:
        tb = max(_round_up(tb // 2, SUBLANE), SUBLANE)
    return tb


@functools.partial(jax.jit, static_argnames=("block_b",))
def sbert_classifier_forward(rep_a, rep_b, w3, bias2d, *, block_b=1024):
    """rep_a, rep_b: (B, D); w3: (3, D, L) from prepare_classifier_params;
    bias2d: (1, L) f32.  Returns (B, L) f32 logits."""
    B, D = rep_a.shape
    w_three, wD, L = w3.shape
    assert w_three == 3 and wD == D and rep_b.shape == (B, D)

    in_itemsize = jnp.dtype(rep_a.dtype).itemsize
    w_itemsize = jnp.dtype(w3.dtype).itemsize
    tb = _choose_batch_tile(B, D, L, block_b, in_itemsize, w_itemsize)
    num_blocks = pl.cdiv(B, tb)          # ragged last block; no HBM batch pad

    vmem_limit = int(min(max(32 << 20,
                             _tile_vmem_bytes(tb, D, L, in_itemsize, w_itemsize)),
                         60 << 20))

    cost = pl.CostEstimate(
        flops=6 * B * D * L,                               # three (tb,D)x(D,L) matmuls
        transcendentals=0,
        bytes_accessed=(2 * B * D * in_itemsize            # dominant: rep reads
                        + 3 * D * L * w_itemsize           # weight slab
                        + B * L * 4 + L * 4),              # logits + bias
    )

    return pl.pallas_call(
        _sbert_classifier_kernel,
        out_shape=jax.ShapeDtypeStruct((B, L), jnp.float32),
        grid=(num_blocks,),
        in_specs=[
            pl.BlockSpec((tb, D), lambda i: (i, 0)),        # rep_a tile (pipelined)
            pl.BlockSpec((tb, D), lambda i: (i, 0)),        # rep_b tile (pipelined)
            pl.BlockSpec((3, D, L), lambda i: (0, 0, 0)),   # weight slab (constant idx -> resident)
            pl.BlockSpec((1, L), lambda i: (0, 0)),         # bias (resident)
        ],
        out_specs=pl.BlockSpec((tb, L), lambda i: (i, 0)),  # L stays narrow on purpose
        compiler_params=pltpu.CompilerParams(
            dimension_semantics=("parallel",),              # megacore / v7x 2-TC split
            vmem_limit_bytes=vmem_limit),
        cost_estimate=cost,
    )(rep_a, rep_b, w3, bias2d)


def reference_forward(rep_a, rep_b, weight, bias):
    feats = jnp.concatenate([rep_a, rep_b, jnp.abs(rep_a - rep_b)], axis=1)
    return feats @ weight.T + bias


if __name__ == "__main__":
    key = jax.random.PRNGKey(0)
    # Two small configs: (a) non-lane-aligned D with a ragged multi-tile batch
    # grid; (b) lane-aligned D (real SBERT dims 384/768/1024 are lane multiples)
    # with a narrow L=3 output.
    for (B, D, L) in [(20, 32, 8), (24, 256, 3)]:
        key, k_a, k_b, k_w, k_bias = jax.random.split(key, 5)
        rep_a = jax.random.normal(k_a, (B, D), dtype=jnp.float32)
        rep_b = jax.random.normal(k_b, (B, D), dtype=jnp.float32)

        # nn.Linear(3*D, L) init: U(-1/sqrt(fan_in), 1/sqrt(fan_in)), deterministic here.
        fan_in = 3 * D
        bound = 1.0 / (fan_in ** 0.5)
        weight = jax.random.uniform(k_w, (L, 3 * D), jnp.float32, -bound, bound)
        bias = jax.random.uniform(k_bias, (L,), jnp.float32, -bound, bound)

        # One-time parameter prep (hoisted out of the per-call path).
        w3, bias2d = prepare_classifier_params(weight, bias)

        out = sbert_classifier_forward(rep_a, rep_b, w3, bias2d, block_b=1024)
        out = jax.block_until_ready(out)

        ref = reference_forward(rep_a, rep_b, weight, bias)
        assert out.shape == (B, L)
        # bf16 weight / MXU operands with f32 accumulation -> loose tolerance vs f32 ref.
        assert jnp.allclose(out, ref, atol=5e-2, rtol=5e-2), \
            f"mismatch vs reference at B={B} D={D} L={L}"

    print("KERNEL_OK")
</pallas_src>

<mosaic_0001>
module attributes {stable_mosaic.version = 11 : i64} {
  func.func @_sbert_classifier_kernel(%arg0: i32, %arg1: memref<16x32xf32, #tpu.memory_space<vmem>>, %arg2: memref<16x32xf32, #tpu.memory_space<vmem>>, %arg3: memref<3x32x8xbf16, #tpu.memory_space<vmem>>, %arg4: memref<1x8xf32, #tpu.memory_space<vmem>>, %arg5: memref<16x8xf32, #tpu.memory_space<vmem>>) attributes {dimension_semantics = [#tpu.dimension_semantics<parallel>], iteration_bounds = array<i64: 2>, scalar_prefetch = 0 : i64, scratch_operands = 0 : i64, tpu.core_type = #tpu.core_type<tc>, window_params = [{transform_indices = @transform_0, window_bounds = array<i64: 16, 32>}, {transform_indices = @transform_1, window_bounds = array<i64: 16, 32>}, {pipeline_mode = #tpu.pipeline_mode<synchronous>, transform_indices = @transform_2, window_bounds = array<i64: 3, 32, 8>}, {pipeline_mode = #tpu.pipeline_mode<synchronous>, transform_indices = @transform_3, window_bounds = array<i64: 1, 8>}, {transform_indices = @transform_4, window_bounds = array<i64: 16, 8>}]} {
    %c0 = arith.constant 0 : index
    %c0_0 = arith.constant 0 : index
    %0 = vector.load %arg1[%c0, %c0_0] : memref<16x32xf32, #tpu.memory_space<vmem>>, vector<16x32xf32>
    %c0_1 = arith.constant 0 : index
    %c0_2 = arith.constant 0 : index
    %1 = vector.load %arg2[%c0_1, %c0_2] : memref<16x32xf32, #tpu.memory_space<vmem>>, vector<16x32xf32>
    %2 = arith.subf %0, %1 : vector<16x32xf32>
    %3 = math.absf %2 : vector<16x32xf32>
    %4 = arith.truncf %0 : vector<16x32xf32> to vector<16x32xbf16>
    %c0_3 = arith.constant 0 : index
    %c0_4 = arith.constant 0 : index
    %c0_5 = arith.constant 0 : index
    %5 = vector.load %arg3[%c0_3, %c0_4, %c0_5] : memref<3x32x8xbf16, #tpu.memory_space<vmem>>, vector<1x32x8xbf16>
    %6 = vector.shape_cast %5 : vector<1x32x8xbf16> to vector<32x8xbf16>
    %cst = arith.constant dense<0.000000e+00> : vector<16x8xf32>
    %7 = tpu.matmul %4, %6, %cst {dimension_numbers = #tpu.dot_dimension_numbers<[1], [0], [0], [1], [0, 0, 1, 1], [], []>} : vector<16x32xbf16>, vector<32x8xbf16>, vector<16x8xf32> -> vector<16x8xf32>
    %8 = arith.truncf %1 : vector<16x32xf32> to vector<16x32xbf16>
    %c1 = arith.constant 1 : index
    %c0_6 = arith.constant 0 : index
    %c0_7 = arith.constant 0 : index
    %9 = vector.load %arg3[%c1, %c0_6, %c0_7] : memref<3x32x8xbf16, #tpu.memory_space<vmem>>, vector<1x32x8xbf16>
    %10 = vector.shape_cast %9 : vector<1x32x8xbf16> to vector<32x8xbf16>
    %cst_8 = arith.constant dense<0.000000e+00> : vector<16x8xf32>
    %11 = tpu.matmul %8, %10, %cst_8 {dimension_numbers = #tpu.dot_dimension_numbers<[1], [0], [0], [1], [0, 0, 1, 1], [], []>} : vector<16x32xbf16>, vector<32x8xbf16>, vector<16x8xf32> -> vector<16x8xf32>
    %12 = arith.addf %7, %11 : vector<16x8xf32>
    %13 = arith.truncf %3 : vector<16x32xf32> to vector<16x32xbf16>
    %c2 = arith.constant 2 : index
    %c0_9 = arith.constant 0 : index
    %c0_10 = arith.constant 0 : index
    %14 = vector.load %arg3[%c2, %c0_9, %c0_10] : memref<3x32x8xbf16, #tpu.memory_space<vmem>>, vector<1x32x8xbf16>
    %15 = vector.shape_cast %14 : vector<1x32x8xbf16> to vector<32x8xbf16>
    %cst_11 = arith.constant dense<0.000000e+00> : vector<16x8xf32>
    %16 = tpu.matmul %13, %15, %cst_11 {dimension_numbers = #tpu.dot_dimension_numbers<[1], [0], [0], [1], [0, 0, 1, 1], [], []>} : vector<16x32xbf16>, vector<32x8xbf16>, vector<16x8xf32> -> vector<16x8xf32>
    %17 = arith.addf %12, %16 : vector<16x8xf32>
    %c0_12 = arith.constant 0 : index
    %c0_13 = arith.constant 0 : index
    %18 = vector.load %arg4[%c0_12, %c0_13] : memref<1x8xf32, #tpu.memory_space<vmem>>, vector<1x8xf32>
    %19 = vector.broadcast %18 : vector<1x8xf32> to vector<16x8xf32>
    %20 = arith.addf %17, %19 : vector<16x8xf32>
    %c0_14 = arith.constant 0 : index
    %c0_15 = arith.constant 0 : index
    %21 = vector.load %arg5[%c0_14, %c0_15] : memref<16x8xf32, #tpu.memory_space<vmem>>, vector<16x8xf32>
    tpu.vector_store %arg5[%c0_14, %c0_15], %20 {strides = array<i32>} : memref<16x8xf32, #tpu.memory_space<vmem>>, vector<16x8xf32>,
    return
  }
  func.func @transform_0(%arg0: i32) -> (i32, i32) {
    %c0_i32 = arith.constant 0 : i32
    %c0_i32_0 = arith.constant 0 : i32
    return %arg0, %c0_i32 : i32, i32
  }
  func.func @transform_1(%arg0: i32) -> (i32, i32) {
    %c0_i32 = arith.constant 0 : i32
    %c0_i32_0 = arith.constant 0 : i32
    return %arg0, %c0_i32 : i32, i32
  }
  func.func @transform_2(%arg0: i32) -> (i32, i32, i32) {
    %c0_i32 = arith.constant 0 : i32
    %c0_i32_0 = arith.constant 0 : i32
    %c0_i32_1 = arith.constant 0 : i32
    %c0_i32_2 = arith.constant 0 : i32
    return %c0_i32, %c0_i32_0, %c0_i32_1 : i32, i32, i32
  }
  func.func @transform_3(%arg0: i32) -> (i32, i32) {
    %c0_i32 = arith.constant 0 : i32
    %c0_i32_0 = arith.constant 0 : i32
    %c0_i32_1 = arith.constant 0 : i32
    return %c0_i32, %c0_i32_0 : i32, i32
  }
  func.func @transform_4(%arg0: i32) -> (i32, i32) {
    %c0_i32 = arith.constant 0 : i32
    %c0_i32_0 = arith.constant 0 : i32
    return %arg0, %c0_i32 : i32, i32
  }
}

</mosaic_0001>

<bundles_post_ra>
// kernel: sbert_classifier_forward.1
= control target key start
LH: loop header
LB: loop body
LE: loop exit
PB: predicated region body
PF: predicated region fallthrough
CT: control target
= control target key end

     0   :  { %s992_s15 = smov 0   ;;  %s994_s16 = smov 0   ;;  %s1105_s0 = inlined_call_operand.vmem [shape: f32[20,32], index: 0, kind: input, shape index: {}]   ;;  %s1106_s1 = inlined_call_operand.vmem [shape: f32[20,32], index: 1, kind: input, shape index: {}]   ;;  %s1107_s2 = inlined_call_operand.vmem [shape: bf16[3,32,8], index: 2, kind: input, shape index: {}]   ;;  %s1108_s3 = inlined_call_operand.vmem [shape: f32[1,8], index: 3, kind: input, shape index: {}]   ;;  %s1109_s4 = inlined_call_operand.vmem [shape: f32[20,8], index: 4, kind: output, shape index: {}]  }
   0x1   :  { %s996_s17 = smov 0  }
   0x2 LB: > { %s1005_s18 = sadd.s32 4294967295, %s931_s17   ;;  %s1007_s19 = sadd.s32 1, %s931_s17   ;;  %s931_s17 = sphi %s996_s17, %s1113_s17   ;;  %s927_s16 = sphi %s994_s16, %s1112_s16   ;;  %s923_s15 = sphi %s992_s15, %s1111_s15  }
   0x3   : > { %s112_s20 = ssub.s32 %s931_s17, %s1007_s19  ;;  %s115_s21 = sadd.s32 1, %s927_s16 }
   0x4   : > { %p113_p0 = scmp.eq.s32.totalorder %s112_s20, 0  ;;  %p125_p1 = scmp.ne.s32.totalorder %s927_s16, %s923_s15 }
   0x5   : > { %p126_p2 = scmp.eq.s32.totalorder %s1005_s18, 1  ;;  %p704_p3 = scmp.ge.s32.totalorder %s931_s17, 1 }
   0x6   : > { %s1015_s22 = scalar_select %p113_p0, %s927_s16, %s115_s21  }
   0x7   : > { %p1017_p4 = por %p126_p2, %p125_p1  ;;  %p190_p5 = scmp.lt.s32.totalorder %s931_s17, 3 }
   0x9   : > { %p191_p6 = pnand %p704_p3, %p190_p5 }
   0xa   : > { %v871_v0 = vld [vmem:[%s1107_s2 + $0x10] sm:$0xff] (!%p191_p6)   ;;  %v965_v1 = vmov (!%p191_p6), 0.0   ;;  %v872_v2 = vld [vmem:[%s1107_s2] sm:$0xff] (!%p191_p6)   ;;  %v873_v3 = vld [vmem:[%s1107_s2 + $0x18] sm:$0xff] (!%p191_p6)   ;;  %vm966_vm0 = vmmov (!%p191_p6), 0   ;;  %s1032_s30 = sshll.u32 (!%p191_p6), %s1005_s18, 1 }
   0xb   : > { %194 = sbr.rel (%p191_p6) target bundleno = 301 (0x12d), region = 36  ;;  %757 = vmatprep.subr.bf16.mxu0 (!%p191_p6), %v965_v1  ;;  %765 = vmatprep.subr.bf16.mxu1 (!%p191_p6), %v965_v1  ;;  %v874_v4 = vld [vmem:[%s1107_s2 + $0x8] sm:$0xff] (!%p191_p6)   ;;  %p233_p7 = scmp.lt.s32.totalorder (!%p191_p6), %s1032_s30, 2  ;;  %v875_v5 = vld [vmem:[%s1107_s2 + $0x20] sm:$0xff] (!%p191_p6)   ;;  %vm293_vm1 = vcmask (!%p191_p6), 261120   ;;  %vm467_vm2 = vcmask (!%p191_p6), 64512  }
   0xc   : > { %758 = vmatpush3.bf16.msra.mxu0 (!%p191_p6), %v871_v0  ;;  %761 = vmatprep.mubr.msk.bf16.mxu0 (!%p191_p6), %vm966_vm0, %v965_v1  ;;  %v876_v16 = vld [vmem:[%s1107_s2 + $0x28] sm:$0xff] (!%p191_p6)   ;;  %s225_s25 = sand.u32 (!%p191_p6), 1, %s923_s15   ;;  %v727_v29 = vld [vmem:[%s1108_s3] ss:$0 sm:$0xff] (!%p191_p6) }
   0xd   : > { %766 = vmatpush3.bf16.msra.mxu1 (!%p191_p6), %v872_v2  ;;  %759 = vmatprep.subr.bf16.mxu0 (!%p191_p6), %v965_v1  ;;  %s705_s26 = sshll.u32 (!%p191_p6), %s225_s25, 4 }
   0xe   : > { %767 = vmatprep.subr.bf16.mxu1 (!%p191_p6), %v965_v1  ;;  %769 = vmatprep.mubr.msk.bf16.mxu1 (!%p191_p6), %vm966_vm0, %v965_v1  ;;  %s1060_s29 = scalar_lea.vmem (!%p191_p6), [#allocation2], %s705_s26  }
  0x10   : > { %760 = vmatpush3.bf16.msra.mxu0 (!%p191_p6), %v873_v3 }
  0x11   : > { %768 = vmatpush3.bf16.msra.mxu1 (!%p191_p6), %v874_v4  ;;  %773 = vmatprep.subr.bf16.mxu0 (!%p191_p6), %v965_v1 }
  0x12   : > { %s234_s7 = scalar_select %p233_p7, %s1032_s30, 2 }
  0x13   : > { %s478_s15 = ssub.s32 (%p1017_p4), 3, %s1032_s30  ;;  %s745_s5 = sshll.u32 (%p1017_p4), %s1005_s18, 4 }
  0x14   : > { %s707_s8 = sshll.u32 %s234_s7, 3  ;;  %p479_p8 = scmp.lt.s32.totalorder (%p1017_p4), %s478_s15, 2 }
  0x15   : > { %s250_s11 = scalar_lea.vmem %s1106_s1, %s707_s8  ;;  %s236_s14 = scalar_lea.vmem %s1105_s0, %s707_s8 }
  0x16   : > { %v264_v6 = vld [vmem:[%s250_s11] sm:$0xff]  ;;  %v265_v7 = vld [vmem:[%s250_s11 + $0x8] sm:$0xff]  ;;  %s1071_s8 = scalar_lea.vmem (%p1017_p4), %s1109_s4, %s745_s5  }
  0x17   : > { %v262_v8 = vld [vmem:[%s236_s14] sm:$0xff]  ;;  %v275_v9 = vpack.c.bf16 %v265_v7, %v264_v6  ;;  %v263_v10 = vld [vmem:[%s236_s14 + $0x8] sm:$0xff] }
  0x18   : > { %v266_v11 = vsub.f32 %v262_v8, %v264_v6  ;;  %v267_v12 = vsub.f32 %v263_v10, %v265_v7  ;;  %v270_v13 = vpack.c.bf16 %v263_v10, %v262_v8 }
  0x19   : > { %762 = vmatmul.mubr.msk.bf16.vlgmr.msra.gmra.mrb[0].mxu0 %vm293_vm1, %v275_v9 }
  0x1a   : > { %v268_v14 = vand.u32 2147483647, %v266_v11  ;;  %v269_v15 = vand.u32 2147483647, %v267_v12  ;;  %770 = vmatmul.mubr.msk.bf16.vlgmr.msra.gmra.mrb[0].mxu1 %vm293_vm1, %v270_v13  ;;  %774 = vmatpush3.bf16.msra.mxu0 %v875_v5 }
  0x1b   : > { %775 = vmatprep.subr.bf16.mxu0 %v965_v1  ;;  %777 = vmatprep.mubr.msk.bf16.mxu0 %vm966_vm0, %v965_v1 }
  0x1c   : > { %v394_v17 = vpack.c.bf16 %v269_v15, %v268_v14 }
  0x1e   : > { %776 = vmatpush3.bf16.msra.mxu0 %v876_v16 }
  0x21   : > { %778 = vmatmul.mubr.msk.bf16.vlgmr.msra.gmra.mrb[4].mxu0 %vm293_vm1, %v394_v17 }
  0xec   : > { %v331_v18 = vpop.f32.mrb[0].mxu0 }
  0xed   : > { %v387_v19 = vpop.f32.mrb[0].mxu1  ;;  %v763_v20 = vpop.f32.mrb[1].mxu0 }
  0xee   : > { %v388_v21 = vadd.f32 %v387_v19, %v331_v18  ;;  %v771_v22 = vpop.f32.mrb[1].mxu1  ;;  %v334_v23 = vpop.f32.mrb[2].mxu0 }
  0xef   : > { %v390_v24 = vpop.f32.mrb[2].mxu1  ;;  %v764_v25 = vpop.f32.mrb[3].mxu0 }
  0xf0   : > { %v391_v26 = vadd.f32 %v390_v24, %v334_v23  ;;  %v772_v27 = vpop.f32.mrb[3].mxu1 }
  0xf4   : > { %v449_v28 = vpop.f32.mrb[4].mxu0 }
  0xf5   : > { %v456_v30 = vadd.f32 %v449_v28, %v388_v21  ;;  %v779_v31 = vpop.f32.mrb[5].mxu0  ;;  %476 = sbr.rel (!%p1017_p4) target bundleno = 301 (0x12d), region = 40 }
  0xf6   : > { %v452_v32 = vpop.f32.mrb[6].mxu0 }
  0xf7   : > { %v465_v33 = vadd.f32 %v727_v29, %v456_v30  ;;  %v457_v34 = vadd.f32 %v452_v32, %v391_v26  ;;  %v780_v35 = vpop.f32.mrb[7].mxu0 }
  0xf9   : > { %468 = vst.msk [vmem:[%s1060_s29] sm:$0xff] %vm467_vm2, %v465_v33  ;;  %v466_v36 = vadd.f32 %v727_v29, %v457_v34 }
  0xfb   : > { %469 = vst.msk [vmem:[%s1060_s29 + $0x8] sm:$0xff] %vm467_vm2, %v466_v36 }
  0xfc   : > { %s1115_s15 = smov (!%p479_p8, %s478_s15), 2 }
  0xfd   : > { %s730_s9 = sshll.u32 %s1115_s15, 7 }
  0xfe   : > { %p733_p9 = scmp.eq.s32.totalorder %s730_s9, 0 }
  0xff   : > { %s1077_s10 = sshrl.u32 (!%p733_p9), %s1115_s15, 1 }
 0x100   : > { %487 = sbr.rel (%p733_p9) target bundleno = 301 (0x12d), region = 44  ;;  %p734_p10 = scmp.le.s32.totalorder (!%p733_p9), %s1077_s10, 0 }
 0x107   : > { %651 = sbr.rel (%p734_p10) target bundleno = 280 (0x118), region = 125  ;;  %s933_s18 = smov (!%p734_p10), %s1071_s8  }
 0x108   : > { %s937_s23 = smov (!%p734_p10), %s1060_s29   ;;  %s941_s30 = smov (!%p734_p10), 0  }
 0x109   : > { %s945_s11 = smov (!%p734_p10), 0  }
 0x10e LB: >> { %v551_v37 = vld [vmem:[%s939_s23] sm:$0xff]  ;;  %v553_v38 = vld [vmem:[%s939_s23 + $0x8] sm:$0xff]  ;;  %s555_s12 = sadd.s32 1, %s943_s30  ;;  %s545_s11 = sadd.s32 1, %s947_s11   ;;  %s947_s11 = sphi %s945_s11, %s545_s11   ;;  %s943_s30 = sphi %s941_s30, %s942_s30   ;;  %s939_s23 = sphi %s937_s23, %s560_s23   ;;  %s935_s18 = sphi %s933_s18, %s561_s18  }
 0x10f   : >> { %552 = vst [vmem:[%s935_s18] sm:$0xff] %v551_v37  ;;  %554 = vst [vmem:[%s935_s18 + $0x8] sm:$0xff] %v553_v38  ;;  %p556_p11 = scmp.ge.s32.totalorder %s555_s12, %s1077_s10  ;;  %p544_p12 = scmp.ge.s32.totalorder %s545_s11, %s1077_s10 }
 0x111   : >> { %s1117_s12 = smov (%p556_p11, %s555_s12), 0  ;;  %547 = sbr.rel (!%p544_p12) target bundleno = 270 (0x10e), region = 131 }
 0x112   : >> { %s735_s13 = sshll.u32 %s1117_s12, 4  ;;  %s942_s30 = smov %s1117_s12  }
 0x113   : >> { %s560_s23 = scalar_lea.vmem %s1060_s29, %s735_s13 [#allocation2]   ;;  %s561_s18 = scalar_lea.vmem %s1071_s8, %s735_s13  }
 0x118 PF: > { %s1087_s14 = sand.u32 1, %s1115_s15   ;;  %s746_s17 = sshll.u32 %s1077_s10, 4 }
 0x119   : > { %s566_s20 = scalar_lea.vmem %s1060_s29, %s746_s17 [#allocation2]   ;;  %s568_s21 = scalar_lea.vmem %s1071_s8, %s746_s17  }
 0x11a   : > { %p740_p13 = scmp.le.s32.totalorder %s1087_s14, 0 }
 0x11b   : > { %s949_s24 = smov (!%p740_p13), %s568_s21   ;;  %s953_s25 = smov (!%p740_p13), %s566_s20  }
 0x11c   : > { %665 = sbr.rel (%p740_p13) target bundleno = 301 (0x12d), region = 136  ;;  %s957_s26 = smov (!%p740_p13), 0  }
 0x11d   : > { %s961_s27 = smov (!%p740_p13), 0  }
 0x123 LB: >> { %v578_v39 = vld [vmem:[%s955_s25] sm:$0xff]  ;;  %s580_s28 = sadd.s32 1, %s959_s26  ;;  %s572_s27 = sadd.s32 1, %s963_s27   ;;  %s963_s27 = sphi %s961_s27, %s572_s27   ;;  %s959_s26 = sphi %s957_s26, %s958_s26   ;;  %s955_s25 = sphi %s953_s25, %s585_s25   ;;  %s951_s24 = sphi %s949_s24, %s586_s24  }
 0x124   : >> { %579 = vst [vmem:[%s951_s24] sm:$0xff] %v578_v39  ;;  %p581_p0 = scmp.ge.s32.totalorder %s580_s28, %s1087_s14  ;;  %p571_p1 = scmp.ge.s32.totalorder %s572_s27, %s1087_s14 }
 0x126   : >> { %s1119_s28 = smov (%p581_p0, %s580_s28), 0  ;;  %574 = sbr.rel (!%p571_p1) target bundleno = 291 (0x123), region = 142 }
 0x127   : >> { %s741_s29 = sshll.u32 %s1119_s28, 3  ;;  %s958_s26 = smov %s1119_s28  }
 0x128   : >> { %s585_s25 = scalar_lea.vmem %s566_s20, %s741_s29 [#allocation2]   ;;  %s586_s24 = scalar_lea.vmem %s568_s21, %s741_s29  }
 0x12d PF: > { %p11_p2 = scmp.ge.s32.totalorder %s1007_s19, 4   ;;  %s1111_s15 = smov %s927_s16 }
 0x12e   : > { %s1112_s16 = smov %s1015_s22  ;;  %s1113_s17 = smov %s1007_s19 }
 0x12f   :  { %13 = sbr.rel (!%p11_p2) target bundleno = 2 (0x2), region = 153 }

</bundles_post_ra>
